<compile_context>
chip_gen: v7x
topology: tpu7x:2x2x1
jax: 0.10.0
libtpu: 0.0.40
codegen_flags: <defaults>
</compile_context>

<pallas_src>
import functools

import jax
import jax.numpy as jnp
from jax.experimental import pallas as pl
from jax.experimental.pallas import tpu as pltpu


_VMEM_BUDGET_BYTES = 40 * 1024 * 1024   # working-set target (v7x-safe)
_VMEM_LIMIT_BYTES = 48 * 1024 * 1024    # scoped VMEM limit handed to Mosaic


def _dla_root_kernel(*refs, n_inputs: int, residual: bool):
    """Fused split-K 1x1 conv + BN bias + residual + ReLU.

    refs layout (inputs then output):
      x_0 .. x_{n-1}   : (1, C_i, THW)   activation tiles (x2 is input 0)
      w_0 .. w_{n-1}   : (C_out, C_i)    BN-scale-folded weight slices
      bias             : (C_out, 1)      beta - running_mean * scale
      out              : (1, C_out, THW)
    """
    x_refs = refs[:n_inputs]
    w_refs = refs[n_inputs:2 * n_inputs]
    bias_ref = refs[2 * n_inputs]
    o_ref = refs[2 * n_inputs + 1]

    # Split-K accumulation over the (never materialized) channel concat.
    acc = jnp.dot(w_refs[0][...], x_refs[0][0],
                  preferred_element_type=jnp.float32)
    for i in range(1, n_inputs):
        acc = acc + jnp.dot(w_refs[i][...], x_refs[i][0],
                            preferred_element_type=jnp.float32)
    acc = acc + bias_ref[...]                          # (C_out,1) -> lanes
    if residual:
        # x2 tile is already resident in VMEM (input 0); no extra HBM read.
        acc = acc + x_refs[0][0].astype(jnp.float32)
    o_ref[0] = jnp.maximum(acc, 0.0).astype(o_ref.dtype)


def _choose_lane_tile(hw, n_batch, c_total, c_out, itemsize, thw_req):
    """Lane (H*W) tile: multiple of 128 (or the full extent), VMEM-budgeted,
    and keeping >= 2 total grid steps so both v7x TensorCores get work."""
    if hw <= 128:
        return hw
    # Double-buffered activation + output bytes per lane column, plus the
    # resident folded weight / bias (f32).
    col_bytes = 2 * (c_total + c_out) * itemsize
    weight_bytes = (c_total + 1) * c_out * 4
    budget = max(_VMEM_BUDGET_BYTES - weight_bytes, 128 * col_bytes)
    max_thw = max(128, budget // col_bytes)
    thw = min(thw_req, hw, max_thw)
    thw = max(128, (thw // 128) * 128)
    if n_batch * pl.cdiv(hw, thw) < 2:
        thw = max(128, (pl.cdiv(hw, 2) // 128) * 128)
    return thw


def _dla_root_nchw(inputs, w_splits, bias, *, residual, thw_req=2048):
    """inputs: list of (N, C_i, H*W); w_splits: list of (C_out, C_i);
    bias: (C_out, 1).  Returns (N, C_out, H*W)."""
    n_inputs = len(inputs)
    n, _, hw = inputs[0].shape
    c_out = int(w_splits[0].shape[0])
    c_total = sum(int(x.shape[1]) for x in inputs)
    out_dtype = inputs[0].dtype
    itemsize = jnp.dtype(out_dtype).itemsize

    thw = _choose_lane_tile(hw, n, c_total, c_out, itemsize, thw_req)
    grid = (n, pl.cdiv(hw, thw))   # masked tail handled by Pallas, no asserts

    x_specs = [pl.BlockSpec((1, int(x.shape[1]), thw), lambda b, j: (b, 0, j))
               for x in inputs]
    w_specs = [pl.BlockSpec(tuple(int(d) for d in w.shape),
                            lambda b, j: (0, 0)) for w in w_splits]
    bias_spec = pl.BlockSpec((c_out, 1), lambda b, j: (0, 0))
    out_spec = pl.BlockSpec((1, c_out, thw), lambda b, j: (b, 0, j))

    kernel = functools.partial(_dla_root_kernel, n_inputs=n_inputs,
                               residual=residual)

    cost = pl.CostEstimate(
        flops=2 * n * hw * c_total * c_out,
        transcendentals=0,
        bytes_accessed=itemsize * n * hw * (c_total + c_out)
        + 4 * c_out * (c_total + 1),
    )

    return pl.pallas_call(
        kernel,
        out_shape=jax.ShapeDtypeStruct((n, c_out, hw), out_dtype),
        grid_spec=pltpu.PrefetchScalarGridSpec(
            num_scalar_prefetch=0,
            grid=grid,
            in_specs=x_specs + w_specs + [bias_spec],
            out_specs=out_spec,
        ),
        compiler_params=pltpu.CompilerParams(
            dimension_semantics=("parallel", "parallel"),
            vmem_limit_bytes=_VMEM_LIMIT_BYTES),
        cost_estimate=cost,
    )(*inputs, *w_splits, bias)


class DLARootPallas:
    """Pallas TPU implementation of DLARoot (eval-mode BatchNorm folded).

    Parameters are created deterministically in __init__ (synthetic weights).
    """

    def __init__(self, in_channels, out_channels, residual, *, key, eps=1e-5):
        self.in_channels = in_channels
        self.out_channels = out_channels
        self.residual = bool(residual)
        self.eps = eps

        k_w, k_g, k_b, k_m, k_v = jax.random.split(key, 5)
        # Conv2d(in, out, kernel_size=1, bias=False): PyTorch weight is
        # (out, in, 1, 1) -> stored here as (out, in).
        self.weight = (jax.random.normal(k_w, (out_channels, in_channels),
                                         jnp.float32) * 0.1)
        # BatchNorm2d(out_channels) parameters / running stats (eval mode).
        self.gamma = 1.0 + 0.1 * jax.random.normal(k_g, (out_channels,),
                                                   jnp.float32)
        self.beta = 0.1 * jax.random.normal(k_b, (out_channels,), jnp.float32)
        self.running_mean = 0.1 * jax.random.normal(k_m, (out_channels,),
                                                    jnp.float32)
        self.running_var = 1.0 + 0.5 * jnp.abs(
            jax.random.normal(k_v, (out_channels,), jnp.float32))

        inv_std = self.gamma / jnp.sqrt(self.running_var + eps)
        # Fold the BN scale into the conv weight; only the bias enters the
        # kernel (one fewer resident VMEM input, one fewer vmul per element).
        self.weight_folded = self.weight * inv_std[:, None]          # (out, in)
        self.bn_bias = (self.beta - self.running_mean * inv_std
                        ).reshape(out_channels, 1)                   # (out, 1)

    def __call__(self, x2, x1, extra, *, lane_tile=2048):
        # x2: (N, C_out, H, W); x1 / extra: NCHW tensors with arbitrary C.
        inputs = (x2, x1) + tuple(extra)
        n, c_out, h, w = x2.shape
        assert c_out == self.out_channels
        c_list = [int(t.shape[1]) for t in inputs]
        assert sum(c_list) == self.in_channels

        hw = h * w
        # NCHW -> (N, C, H*W): contiguous reshape, no transpose, no concat.
        flat_inputs = [t.reshape(t.shape[0], t.shape[1], hw) for t in inputs]

        # Split the folded weight to match the fused (virtual) channel concat.
        offs = [0]
        for c in c_list:
            offs.append(offs[-1] + c)
        w_splits = [self.weight_folded[:, offs[i]:offs[i + 1]]
                    for i in range(len(inputs))]

        out = _dla_root_nchw(flat_inputs, w_splits, self.bn_bias,
                             residual=self.residual, thw_req=lane_tile)
        return out.reshape(n, c_out, h, w)

    # Pure-JAX reference for validation.
    def reference(self, x2, x1, extra):
        x_cat = jnp.concatenate((x2, x1) + tuple(extra), axis=1)
        y = jnp.einsum("nchw,oc->nohw", x_cat, self.weight)
        inv_std = self.gamma / jnp.sqrt(self.running_var + self.eps)
        scale = inv_std.reshape(1, -1, 1, 1)
        bias = (self.beta - self.running_mean * inv_std).reshape(1, -1, 1, 1)
        y = y * scale + bias
        if self.residual:
            y = y + x2
        return jnp.maximum(y, 0.0)


if __name__ == "__main__":
    key = jax.random.PRNGKey(0)
    k_param, k_x2, k_x1, k_e = jax.random.split(key, 4)

    # Small shapes consistent with the module's forward:
    #   x2: (N, C_out, H, W) so the residual add is valid,
    #   x1 and one `extra` tensor with arbitrary channel counts.
    N, H, W = 2, 8, 8
    out_channels = 16
    c_x1, c_extra = 16, 8
    in_channels = out_channels + c_x1 + c_extra  # concatenated channels

    x2 = jax.random.normal(k_x2, (N, out_channels, H, W), jnp.float32)
    x1 = jax.random.normal(k_x1, (N, c_x1, H, W), jnp.float32)
    extra = [jax.random.normal(k_e, (N, c_extra, H, W), jnp.float32)]

    module = DLARootPallas(in_channels, out_channels, residual=True,
                           key=k_param)

    out = module(x2, x1, extra)
    out = jax.block_until_ready(out)

    ref = module.reference(x2, x1, extra)
    assert out.shape == (N, out_channels, H, W)
    assert jnp.allclose(out, ref, atol=1e-4, rtol=1e-4), "mismatch vs reference"

    print("KERNEL_OK")
</pallas_src>

<mosaic_0001>
module attributes {stable_mosaic.version = 11 : i64} {
  func.func @_dla_root_kernel(%arg0: i32, %arg1: i32, %arg2: memref<1x16x64xf32, #tpu.memory_space<vmem>>, %arg3: memref<1x16x64xf32, #tpu.memory_space<vmem>>, %arg4: memref<1x8x64xf32, #tpu.memory_space<vmem>>, %arg5: memref<16x16xf32, #tpu.memory_space<vmem>>, %arg6: memref<16x16xf32, #tpu.memory_space<vmem>>, %arg7: memref<16x8xf32, #tpu.memory_space<vmem>>, %arg8: memref<16x1xf32, #tpu.memory_space<vmem>>, %arg9: memref<1x16x64xf32, #tpu.memory_space<vmem>>) attributes {dimension_semantics = [#tpu.dimension_semantics<parallel>, #tpu.dimension_semantics<parallel>], iteration_bounds = array<i64: 2, 1>, scalar_prefetch = 0 : i64, scratch_operands = 0 : i64, tpu.core_type = #tpu.core_type<tc>, window_params = [{transform_indices = @transform_0, window_bounds = array<i64: 1, 16, 64>}, {transform_indices = @transform_1, window_bounds = array<i64: 1, 16, 64>}, {transform_indices = @transform_2, window_bounds = array<i64: 1, 8, 64>}, {pipeline_mode = #tpu.pipeline_mode<synchronous>, transform_indices = @transform_3, window_bounds = array<i64: 16, 16>}, {pipeline_mode = #tpu.pipeline_mode<synchronous>, transform_indices = @transform_4, window_bounds = array<i64: 16, 16>}, {pipeline_mode = #tpu.pipeline_mode<synchronous>, transform_indices = @transform_5, window_bounds = array<i64: 16, 8>}, {pipeline_mode = #tpu.pipeline_mode<synchronous>, transform_indices = @transform_6, window_bounds = array<i64: 16, 1>}, {transform_indices = @transform_7, window_bounds = array<i64: 1, 16, 64>}]} {
    %c0 = arith.constant 0 : index
    %c0_0 = arith.constant 0 : index
    %0 = vector.load %arg5[%c0, %c0_0] : memref<16x16xf32, #tpu.memory_space<vmem>>, vector<16x16xf32>
    %c0_1 = arith.constant 0 : index
    %c0_2 = arith.constant 0 : index
    %c0_3 = arith.constant 0 : index
    %1 = vector.load %arg2[%c0_1, %c0_2, %c0_3] : memref<1x16x64xf32, #tpu.memory_space<vmem>>, vector<1x16x64xf32>
    %2 = vector.shape_cast %1 : vector<1x16x64xf32> to vector<16x64xf32>
    %cst = arith.constant dense<0.000000e+00> : vector<16x64xf32>
    %3 = tpu.matmul %0, %2, %cst {dimension_numbers = #tpu.dot_dimension_numbers<[1], [0], [0], [1], [0, 0, 1, 1], [], []>} : vector<16x16xf32>, vector<16x64xf32>, vector<16x64xf32> -> vector<16x64xf32>
    %c0_4 = arith.constant 0 : index
    %c0_5 = arith.constant 0 : index
    %4 = vector.load %arg6[%c0_4, %c0_5] : memref<16x16xf32, #tpu.memory_space<vmem>>, vector<16x16xf32>
    %c0_6 = arith.constant 0 : index
    %c0_7 = arith.constant 0 : index
    %c0_8 = arith.constant 0 : index
    %5 = vector.load %arg3[%c0_6, %c0_7, %c0_8] : memref<1x16x64xf32, #tpu.memory_space<vmem>>, vector<1x16x64xf32>
    %6 = vector.shape_cast %5 : vector<1x16x64xf32> to vector<16x64xf32>
    %cst_9 = arith.constant dense<0.000000e+00> : vector<16x64xf32>
    %7 = tpu.matmul %4, %6, %cst_9 {dimension_numbers = #tpu.dot_dimension_numbers<[1], [0], [0], [1], [0, 0, 1, 1], [], []>} : vector<16x16xf32>, vector<16x64xf32>, vector<16x64xf32> -> vector<16x64xf32>
    %8 = arith.addf %3, %7 : vector<16x64xf32>
    %c0_10 = arith.constant 0 : index
    %c0_11 = arith.constant 0 : index
    %9 = vector.load %arg7[%c0_10, %c0_11] : memref<16x8xf32, #tpu.memory_space<vmem>>, vector<16x8xf32>
    %c0_12 = arith.constant 0 : index
    %c0_13 = arith.constant 0 : index
    %c0_14 = arith.constant 0 : index
    %10 = vector.load %arg4[%c0_12, %c0_13, %c0_14] : memref<1x8x64xf32, #tpu.memory_space<vmem>>, vector<1x8x64xf32>
    %11 = vector.shape_cast %10 : vector<1x8x64xf32> to vector<8x64xf32>
    %cst_15 = arith.constant dense<0.000000e+00> : vector<16x64xf32>
    %12 = tpu.matmul %9, %11, %cst_15 {dimension_numbers = #tpu.dot_dimension_numbers<[1], [0], [0], [1], [0, 0, 1, 1], [], []>} : vector<16x8xf32>, vector<8x64xf32>, vector<16x64xf32> -> vector<16x64xf32>
    %13 = arith.addf %8, %12 : vector<16x64xf32>
    %c0_16 = arith.constant 0 : index
    %c0_17 = arith.constant 0 : index
    %14 = vector.load %arg8[%c0_16, %c0_17] : memref<16x1xf32, #tpu.memory_space<vmem>>, vector<16x1xf32>
    %15 = vector.broadcast %14 : vector<16x1xf32> to vector<16x64xf32>
    %16 = arith.addf %13, %15 : vector<16x64xf32>
    %c0_18 = arith.constant 0 : index
    %c0_19 = arith.constant 0 : index
    %c0_20 = arith.constant 0 : index
    %17 = vector.load %arg2[%c0_18, %c0_19, %c0_20] : memref<1x16x64xf32, #tpu.memory_space<vmem>>, vector<1x16x64xf32>
    %18 = vector.shape_cast %17 : vector<1x16x64xf32> to vector<16x64xf32>
    %19 = arith.addf %16, %18 : vector<16x64xf32>
    %cst_21 = arith.constant 0.000000e+00 : f32
    %20 = vector.broadcast %cst_21 : f32 to vector<16x64xf32>
    %21 = arith.maximumf %19, %20 : vector<16x64xf32>
    %c0_22 = arith.constant 0 : index
    %c0_23 = arith.constant 0 : index
    %c0_24 = arith.constant 0 : index
    %22 = vector.load %arg9[%c0_22, %c0_23, %c0_24] : memref<1x16x64xf32, #tpu.memory_space<vmem>>, vector<1x16x64xf32>
    %23 = vector.shape_cast %22 : vector<1x16x64xf32> to vector<16x64xf32>
    %24 = vector.shape_cast %21 : vector<16x64xf32> to vector<1x16x64xf32>
    tpu.vector_store %arg9[%c0_22, %c0_23, %c0_24], %24 {strides = array<i32>} : memref<1x16x64xf32, #tpu.memory_space<vmem>>, vector<1x16x64xf32>,
    return
  }
  func.func @transform_0(%arg0: i32, %arg1: i32) -> (i32, i32, i32) {
    %c0_i32 = arith.constant 0 : i32
    %c0_i32_0 = arith.constant 0 : i32
    return %arg0, %c0_i32, %arg1 : i32, i32, i32
  }
  func.func @transform_1(%arg0: i32, %arg1: i32) -> (i32, i32, i32) {
    %c0_i32 = arith.constant 0 : i32
    %c0_i32_0 = arith.constant 0 : i32
    return %arg0, %c0_i32, %arg1 : i32, i32, i32
  }
  func.func @transform_2(%arg0: i32, %arg1: i32) -> (i32, i32, i32) {
    %c0_i32 = arith.constant 0 : i32
    %c0_i32_0 = arith.constant 0 : i32
    return %arg0, %c0_i32, %arg1 : i32, i32, i32
  }
  func.func @transform_3(%arg0: i32, %arg1: i32) -> (i32, i32) {
    %c0_i32 = arith.constant 0 : i32
    %c0_i32_0 = arith.constant 0 : i32
    %c0_i32_1 = arith.constant 0 : i32
    return %c0_i32, %c0_i32_0 : i32, i32
  }
  func.func @transform_4(%arg0: i32, %arg1: i32) -> (i32, i32) {
    %c0_i32 = arith.constant 0 : i32
    %c0_i32_0 = arith.constant 0 : i32
    %c0_i32_1 = arith.constant 0 : i32
    return %c0_i32, %c0_i32_0 : i32, i32
  }
  func.func @transform_5(%arg0: i32, %arg1: i32) -> (i32, i32) {
    %c0_i32 = arith.constant 0 : i32
    %c0_i32_0 = arith.constant 0 : i32
    %c0_i32_1 = arith.constant 0 : i32
    return %c0_i32, %c0_i32_0 : i32, i32
  }
  func.func @transform_6(%arg0: i32, %arg1: i32) -> (i32, i32) {
    %c0_i32 = arith.constant 0 : i32
    %c0_i32_0 = arith.constant 0 : i32
    %c0_i32_1 = arith.constant 0 : i32
    return %c0_i32, %c0_i32_0 : i32, i32
  }
  func.func @transform_7(%arg0: i32, %arg1: i32) -> (i32, i32, i32) {
    %c0_i32 = arith.constant 0 : i32
    %c0_i32_0 = arith.constant 0 : i32
    return %arg0, %c0_i32, %arg1 : i32, i32, i32
  }
}

</mosaic_0001>

<bundles_post_ra>
// kernel: tpu_custom_call.1
= control target key start
LH: loop header
LB: loop body
LE: loop exit
PB: predicated region body
PF: predicated region fallthrough
CT: control target
= control target key end

     0   :  { %12 = vsyncpa [#allocation3], 0  ;;  %s1510_s0 = inlined_call_operand.vmem [shape: f32[2,16,64], index: 0, kind: input, shape index: {}]   ;;  %s1511_s1 = inlined_call_operand.hbm [shape: f32[2,16,64], index: 1, kind: input, shape index: {}]   ;;  %s1512_s2 = inlined_call_operand.vmem [shape: f32[2,8,64], index: 2, kind: input, shape index: {}]   ;;  %s1513_s3 = inlined_call_operand.hbm [shape: f32[16,16], index: 3, kind: input, shape index: {}]   ;;  %s1514_s4 = inlined_call_operand.hbm [shape: f32[16,16], index: 4, kind: input, shape index: {}]   ;;  %s1515_s5 = inlined_call_operand.vmem [shape: f32[16,8], index: 5, kind: input, shape index: {}]   ;;  %s1516_s6 = inlined_call_operand.vmem [shape: f32[16,1], index: 6, kind: input, shape index: {}]   ;;  %s1517_s7 = inlined_call_operand.hbm [shape: f32[2,16,64], index: 7, kind: output, shape index: {}]  }
   0x1   :  { %14 = vsyncpa [#allocation3 + $0x1], 0 }
   0x2   :  { %15 = vsyncpa [#allocation6], 0 }
   0x3   :  { %16 = vsyncpa [#allocation4], 0 }
   0x4   :  { %18 = vsyncpa [#allocation4 + $0x1], 0  ;;  %s1218_s24 = smov 0   ;;  %s1220_s25 = smov 0  }
   0x5   :  { %s1222_s26 = smov 0   ;;  %s1224_s27 = smov 0  }
   0x6   :  { %s1226_s28 = smov 0   ;;  %s1228_s29 = smov 0  }
   0x7 LB: > { %1525 = sst [smem:[#allocation12_spill]] %s1147_s24  ;;  %s833_s30 = sadd.s32 4294967295, %s1167_s29   ;;  %s1167_s29 = sphi %s1228_s29, %s24_s29   ;;  %s1163_s28 = sphi %s1226_s28, %s1547_s28   ;;  %s1159_s27 = sphi %s1224_s27, %s1546_s27   ;;  %s1155_s26 = sphi %s1222_s26, %s1545_s26   ;;  %s1151_s25 = sphi %s1220_s25, %s1544_s25   ;;  %s1147_s24 = sphi %s1218_s24, %s1543_s24  }
   0x8   : > { %s834_s8 = sadd.s32 4294967294, %s1167_s29   ;;  %p86_p0 = scmp.ne.s32.totalorder %s1151_s25, %s1147_s24 }
   0x9   : > { %p1252_p1 = scmp.eq.s32.totalorder %s833_s30, 0  ;;  %p1256_p2 = scmp.eq.s32.totalorder %s833_s30, 1 }
   0xa   : > { %p230_p3 = scmp.eq.s32.totalorder %s834_s8, 1  ;;  %p835_p5 = scmp.ge.s32.totalorder %s1167_s29, 1 }
   0xb   : > { %s1526_s9 = scalar_select %p1252_p1, 1, 0 }
   0xc   : > { %p1262_p4 = por %p1252_p1, %p86_p0  ;;  %p1267_p6 = por %p230_p3, %p86_p0 }
   0xd   : > { %p237_p7 = scmp.lt.s32.totalorder %s1167_s29, 3  ;;  %s1169_s14 = smov [#allocation5]  }
   0xe   : > { %s1528_s11 = scalar_select %p1262_p4, 1, 0 }
   0xf   : > { %s1529_s12 = scalar_select %p1267_p6, 1, 0 }
  0x10   : > { %p1272_p8 = pnand %p835_p5, %p237_p7  ;;  %s249_s15 = sshll.u32 %s1169_s14, 4  ;;  %s1276_s15 = int_to_ptr.vmem [resolvable:$true] %s249_s15 }
  0x11   : > { %1530 = sst [smem:[#allocation13_spill]] %s1529_s12  ;;  %s1170_s17 = smov [#allocation7]  }
  0x12   : > { %p918_p9 = pneg %p1272_p8  ;;  %s262_s18 = sshll.u32 %s1170_s17, 4  ;;  %s1287_s18 = int_to_ptr.vmem [resolvable:$true] %s262_s18 }
  0x13   : > { %s995_s21 = scalar_lea.hbm %s1513_s3, 256 }
  0x14   : > { %p1283_p11 = pnand %p918_p9, %p1252_p1  ;;  %p996_p12 = scmp.ne.s32.totalorder %s1513_s3, %s995_s21 }
  0x15   : > { %p1002_p5 = scmp.lt.u32.totalorder %s995_s21, %s1513_s3 }
  0x16   : > { %p997_p13 = pneg %p1283_p11 }
  0x18   : > { %p998_p0 = pnand %p997_p13, %p996_p12 }
  0x1a   : > { %p999_p3 = pneg %p998_p0 }
  0x1c   : > { %p1004_p7 = pnand %p1002_p5, %p999_p3 }
  0x1e   : > { %1007 = shalt.err (!%p1004_p7)
}
  0x1f   : > { %s1008_s14 = scalar_lea.vmem %s1276_s15, 256  ;;  %p1016_p1 = scmp.lt.s32.totalorder %s1276_s15, %s1276_s15 }
  0x20   : > { %p1009_p9 = scmp.ne.s32.totalorder %s1276_s15, %s1008_s14  ;;  %p1017_p12 = scmp.lt.s32.totalorder %s1008_s14, %s1008_s14 }
  0x22   : > { %p1011_p10 = pnand %p1009_p9, %p997_p13  ;;  %p1018_p0 = por %p1017_p12, %p1016_p1 }
  0x24   : > { %p1012_p6 = pneg %p1011_p10 }
  0x26   : > { %p1019_p4 = pnand %p1018_p0, %p1012_p6 }
  0x28   : > { %1022 = shalt.err (!%p1019_p4)
}
  0x29   : > { %s1523_s17 = smov 128   ;;  %s1172_s19 = smov 8  }
  0x2a   : > { %921 = dma.hbm_to_vmem [thread:$0]  (!%p1283_p11), %s1513_s3, 256, %s1276_s15, [#allocation6], %s1523_s17, %s1523_s17, %s1172_s19  }
  0x2b   : > { %s1023_s30 = scalar_lea.hbm %s1514_s4, 256 }
  0x2c   : > { %p1024_p1 = scmp.ne.s32.totalorder %s1514_s4, %s1023_s30  ;;  %p1030_p10 = scmp.lt.u32.totalorder %s1023_s30, %s1514_s4 }
  0x2e   : > { %p1026_p4 = pnand %p1024_p1, %p997_p13 }
  0x30   : > { %p1027_p6 = pneg %p1026_p4 }
  0x32   : > { %p1032_p3 = pnand %p1030_p10, %p1027_p6 }
  0x34   : > { %1035 = shalt.err (!%p1032_p3)
}
  0x35   : > { %s1036_s15 = scalar_lea.vmem %s1287_s18, 256  ;;  %p1044_p12 = scmp.lt.s32.totalorder %s1287_s18, %s1287_s18 }
  0x36   : > { %p1037_p5 = scmp.ne.s32.totalorder %s1287_s18, %s1036_s15  ;;  %p1045_p0 = scmp.lt.s32.totalorder %s1036_s15, %s1036_s15 }
  0x38   : > { %p1039_p7 = pnand %p1037_p5, %p997_p13  ;;  %p1046_p1 = por %p1045_p0, %p1044_p12 }
  0x3a   : > { %p1040_p9 = pneg %p1039_p7 }
  0x3c   : > { %p1047_p4 = pnand %p1046_p1, %p1040_p9 }
  0x3e   : > { %1050 = shalt.err (!%p1047_p4)
}
  0x3f   : > { %924 = dma.hbm_to_vmem [thread:$0]  (!%p1283_p11), %s1514_s4, 256, %s1287_s18, [#allocation6], %s1523_s17, %s1523_s17, %s1172_s19  }
  0x40   : > { %s36_s16 = sadd.s32 1, %s1163_s28  ;;  %s73_s20 = sadd.s32 1, %s1155_s26 }
  0x41   : > { %p38_p13 = scmp.ge.s32.totalorder %s36_s16, 2  ;;  %p80_p6 = scmp.ne.s32.totalorder %s1155_s26, %s1151_s25 }
  0x42   : > { %p81_p10 = scmp.eq.s32.totalorder %s1167_s29, 0  ;;  %p935_p3 = scmp.lt.s32.totalorder %s1167_s29, 2 }
  0x43   : > { %s1549_s16 = smov (%p38_p13, %s36_s16), 0  ;;  %p1357_p7 = por %p1256_p2, %p80_p6 }
  0x44   : > { %p82_p5 = por %p81_p10, %p80_p6  ;;  %s68_s22 = ssub.s32 %s1163_s28, %s1549_s16 }
  0x45   : > { %s1533_s21 = scalar_select %p1357_p7, 1, 0 }
  0x46   : > { %s293_s23 = sand.u32 1, %s1155_s26   ;;  %p71_p9 = scmp.eq.s32.totalorder %s68_s22, 0 }
  0x47   : > { %s839_s18 = sshll.u32 %s293_s23, 4  ;;  %s861_s30 = sshll.u32 %s1163_s28, 8 }
  0x48   : > { %s1366_s8 = scalar_select %p71_p9, %s1155_s26, %s73_s20  }
  0x49   : > { %s1371_s24 = scalar_lea.hbm %s1511_s1, %s861_s30  ;;  %s297_s10 = scalar_lea.vmem [#allocation2], %s839_s18 }
  0x4a   : > { %s305_s12 = sshll.u32 %s297_s10, 4  ;;  %p1375_p2 = pnand %p935_p3, %p82_p5  ;;  %s1379_s12 = int_to_ptr.vmem [resolvable:$true] %s305_s12 }
  0x4b   : > { %s1381_s20 = scalar_lea.sflag [#allocation3], %s293_s23  ;;  %s1051_s22 = scalar_lea.hbm %s1371_s24, 256 }
  0x4c   : > { %p1052_p11 = scmp.ne.s32.totalorder %s1371_s24, %s1051_s22  ;;  %p1053_p12 = pneg %p1375_p2 }
  0x4d   : > { %s1056_s14 = scalar_lea.hbm %s1511_s1, 512  ;;  %p1057_p4 = scmp.lt.u32.totalorder %s1371_s24, %s1511_s1 }
  0x4e   : > { %p1054_p0 = pnand %p1053_p12, %p1052_p11  ;;  %p1058_p13 = scmp.lt.u32.totalorder %s1056_s14, %s1051_s22 }
  0x4f   : > { %p1060_p10 = scmp.lt.u32.totalorder %s1051_s22, %s1371_s24 }
  0x50   : > { %p1055_p1 = pneg %p1054_p0  ;;  %p1059_p6 = por %p1058_p13, %p1057_p4 }
  0x52   : > { %p1061_p3 = por %p1060_p10, %p1059_p6 }
  0x54   : > { %p1062_p5 = pnand %p1061_p3, %p1055_p1 }
  0x56   : > { %1065 = shalt.err (!%p1062_p5)
}
  0x57   : > { %s1066_s23 = scalar_lea.vmem %s1379_s12, 256  ;;  %s1173_s18 = smov [#allocation2]  }
  0x58   : > { %p1067_p9 = scmp.ne.s32.totalorder %s1379_s12, %s1066_s23  ;;  %s1071_s30 = sshll.u32 %s1173_s18, 4  ;;  %s1072_s30 = int_to_ptr.vmem [resolvable:$false] %s1071_s30 }
  0x59   : > { %s1073_s15 = scalar_lea.vmem %s1072_s30, 512  ;;  %p1074_p7 = scmp.lt.s32.totalorder %s1379_s12, %s1072_s30 }
  0x5a   : > { %p1069_p11 = pnand %p1067_p9, %p1053_p12  ;;  %p1075_p4 = scmp.lt.s32.totalorder %s1073_s15, %s1066_s23 }
  0x5c   : > { %p1070_p0 = pneg %p1069_p11  ;;  %p1076_p13 = por %p1075_p4, %p1074_p7 }
  0x5e   : > { %p1077_p6 = pnand %p1076_p13, %p1070_p0 }
  0x60   : > { %1080 = shalt.err (!%p1077_p6)
}
  0x61   : > { %s1535_s22 = smov 128   ;;  %327 = sbr.rel (%p1272_p8) target bundleno = 365 (0x16d), region = 48 }
  0x62   : > { %928 = dma.hbm_to_vmem [thread:$0]  (!%p1375_p2), %s1371_s24, 256, %s1379_s12, %s1381_s20, %s1535_s22, %s1535_s22, %s1172_s19  }
  0x63   : > { %s1415_s14 = sand.u32 (!%p1272_p8), 1, %s1151_s25   ;;  %p1536_p7 = scmp.ne.s32.totalorder (!%p1272_p8), %s1528_s11, 0 }
  0x64   : > { %s843_s10 = sshll.u32 (!%p1272_p8), %s1415_s14, 4  ;;  %s330_s23 = scalar_lea.sflag (!%p1272_p8), [#allocation3], %s1415_s14 }
  0x65   : > { %s333_s17 = scalar_lea.vmem (!%p1272_p8), [#allocation2], %s843_s10 }
  0x68   : > { %1134 = dma.done.wait (%p1536_p7), %s330_s23, 256  }
  0x69   : > { %1136 = vsyncadd (%p1536_p7), %s330_s23, 4294967040  ;;  %p1537_p2 = scmp.ne.s32.totalorder %s1526_s9, 0 }
  0x6b   : > { %1138 = dma.done.wait (%p1537_p2), [#allocation6], 512  }
  0x6c   : > { %1140 = vsyncadd (%p1537_p2), [#allocation6], 4294966784  ;;  %p387_p8 = scmp.lt.s32.totalorder %s1159_s27, 1  ;;  %v1174_v0 = vmov 0   ;;  %vm410_vm0 = vcmask 130048   ;;  %v402_v3 = vld [vmem:[#allocation5] sm:$0xff] }
  0x6d   : > { %994 = vset.pattern.permute.xlu0 %v1174_v0  ;;  %886 = vmatprep.mubr.msk.f32.mxu0 %vm410_vm0, %v402_v3  ;;  %v408_v5 = vld [vmem:[%s333_s17] sm:$0xff]  ;;  %v409_v7 = vld [vmem:[%s333_s17 + $0x8] sm:$0xff]  ;;  %vm576_vm1 = vcmask 64512   ;;  %s863_s20 = sshll.u32 %s1159_s27, 8  ;;  %vm678_vm2 = vcmask 523264   ;;  %p1538_p1 = scmp.ne.s32.totalorder %s1533_s21, 0 }
  0x6e   : > { %s388_s13 = scalar_select %p387_p8, %s1159_s27, 1  ;;  %v406_v8 = vld [vmem:[#allocation7] sm:$0xff]  ;;  %v894_v9 = vpack.c.bf16 %v409_v7, %v408_v5  ;;  %v660_v10 = vld [vmem:[%s1516_s6] sm:$0xff]  ;;  %v403_v11 = vld [vmem:[#allocation5 + $0x8] sm:$0xff] }
  0x6f   : > { %879 = vmatprep.mubr.msk.f32.mxu1 %vm410_vm0, %v406_v8  ;;  %664 = vperm.xlu0 %994, %v660_v10   ;;  %v573_v12 = vld [vmem:[%s1515_s5] sm:$0xff]  ;;  %v407_v13 = vld [vmem:[#allocation7 + $0x8] sm:$0xff]  ;;  %v661_v14 = vld [vmem:[%s1516_s6 + $0x8] sm:$0xff]  ;;  %s1459_s9 = scalar_lea.hbm %s1517_s7, %s863_s20  ;;  %s682_s27 = scalar_lea.sflag [#allocation4], %s1415_s14 }
  0x70   : > { %s862_s19 = sshll.u32 %s388_s13, 4  ;;  %s849_s24 = sshll.u32 %s388_s13, 3  ;;  %895 = vmatprep.subr.bf16.mxu1 %v894_v9  ;;  %v574_v15 = vld [vmem:[%s1515_s5 + $0x8] sm:$0xff] }
  0x71   : > { %s394_s18 = scalar_lea.vmem %s1510_s0, %s862_s19  ;;  %s401_s15 = scalar_lea.vmem %s1512_s2, %s849_s24  ;;  %897 = vmatpush3.bf16.msra.mxu1 %v894_v9 }
  0x72   : > { %v404_v1 = vld [vmem:[%s394_s18] sm:$0xff]  ;;  %v405_v2 = vld [vmem:[%s394_s18 + $0x8] sm:$0xff]  ;;  %s386_s18 = scalar_lea.vmem [#allocation8], %s843_s10  ;;  %s1175_s22 = smov [#allocation8]  }
  0x73   : > { %v898_v4 = vpack.c.bf16 %v405_v2, %v404_v1  ;;  %v575_v6 = vld [vmem:[%s401_s15] sm:$0xff]  ;;  %669 = vperm.xlu0 %994, %v661_v14   ;;  %s696_s11 = sshll.u32 %s386_s18, 4  ;;  %s1085_s23 = sshll.u32 %s1175_s22, 4  ;;  %s1461_s11 = int_to_ptr.vmem [resolvable:$true] %s696_s11  ;;  %s1086_s23 = int_to_ptr.vmem [resolvable:$false] %s1085_s23 }
  0x74   : > { %880 = vmatmul.mubr.msk.f32.vlgmr.msra.gmra.mrb[0].mxu1 %vm410_vm0, %v407_v13  ;;  %s1081_s10 = scalar_lea.vmem %s1461_s11, 256  ;;  %s1087_s13 = scalar_lea.vmem %s1086_s23, 512 }
  0x75   : > { %899 = vmatprep.subr.bf16.mxu0 %v898_v4  ;;  %p1082_p12 = scmp.ne.s32.totalorder %s1461_s11, %s1081_s10  ;;  %p1088_p5 = scmp.lt.s32.totalorder %s1461_s11, %s1086_s23 }
  0x76   : > { %901 = vmatpush3.bf16.msra.mxu0 %v898_v4  ;;  %p1089_p9 = scmp.lt.s32.totalorder %s1087_s13, %s1081_s10 }
  0x77   : > { %889 = vmatprep.subr.mxu0 %v575_v6  ;;  %p1083_p10 = pnand %p1082_p12, %p1538_p1 }
  0x78   : > { %p1090_p11 = por %p1089_p9, %p1088_p5 }
  0x79   : > { %887 = vmatmul.mubr.msk.f32.vlgmr.msra.gmra.mrb[0].mxu0 %vm410_vm0, %v403_v11  ;;  %p1084_p3 = pneg %p1083_p10 }
  0x7a   : > { %890 = vmatpush3.msra.mxu0 %v575_v6  ;;  %891 = vmatprep.mubr.msk.f32.mxu0 %vm576_vm1, %v573_v12 }
  0x7b   : > { %p1091_p0 = pnand %p1090_p11, %p1084_p3 }
  0x81   : > { %892 = vmatmul.mubr.msk.f32.vlgmr.msra.gmra.mrb[0].mxu0 %vm576_vm1, %v574_v15 }
  0xee   : > { %v665_v18 = vpop.permute.xlu0 %664 }
  0xf2   : > { %v670_v22 = vpop.permute.xlu0 %669 }
 0x147   : > { %v881_v16 = vpop.f32.mrb[0].mxu1 }
 0x148   : > { %v483_v17 = vpop.f32.mrb[1].mxu1 }
 0x154   : > { %v893_v19 = vpop.f32.mrb[0].mxu0 }
 0x155   : > { %v902_v20 = vadd.f32 %v893_v19, %v881_v16  ;;  %v649_v21 = vpop.f32.mrb[1].mxu0 }
 0x156   : > { %v903_v23 = vadd.f32 %v649_v21, %v483_v17 }
 0x157   : > { %v673_v24 = vadd.f32 %v902_v20, %v670_v22 }
 0x158   : > { %v672_v25 = vadd.f32 %v903_v23, %v665_v18 }
 0x159   : > { %v675_v26 = vadd.f32 %v673_v24, %v405_v2 }
 0x15a   : > { %v674_v27 = vadd.f32 %v672_v25, %v404_v1 }
 0x15b   : > { %v677_v28 = vmax.f32 %v675_v26, 0.0 }
 0x15c   : > { %v676_v29 = vmax.f32 %v674_v27, 0.0 }
 0x15d   : > { %680 = vst.msk [vmem:[%s386_s18 + $0x8] sm:$0xff] %vm678_vm2, %v677_v28 }
 0x15e   : > { %679 = vst.msk [vmem:[%s386_s18] sm:$0xff] %vm678_vm2, %v676_v29 }
 0x15f   : > { %1094 = shalt.err (!%p1091_p0)
}
 0x160   : > { %s1095_s17 = scalar_lea.hbm %s1459_s9, 256  ;;  %s1099_s12 = scalar_lea.hbm %s1517_s7, 512 }
 0x161   : > { %p1096_p4 = scmp.ne.s32.totalorder %s1459_s9, %s1095_s17  ;;  %p1100_p7 = scmp.lt.u32.totalorder %s1459_s9, %s1517_s7 }
 0x162   : > { %p1101_p2 = scmp.lt.u32.totalorder %s1099_s12, %s1095_s17  ;;  %p1103_p12 = scmp.lt.u32.totalorder %s1095_s17, %s1459_s9 }
 0x163   : > { %p1097_p13 = pnand %p1096_p4, %p1538_p1 }
 0x164   : > { %p1102_p8 = por %p1101_p2, %p1100_p7 }
 0x165   : > { %p1098_p6 = pneg %p1097_p13 }
 0x166   : > { %p1104_p10 = por %p1103_p12, %p1102_p8 }
 0x168   : > { %p1105_p3 = pnand %p1104_p10, %p1098_p6 }
 0x16a   : > { %1108 = shalt.err (!%p1105_p3)
}
 0x16b   : > { %s1176_s30 = smov 128   ;;  %s1177_s15 = smov 8  }
 0x16c   : > { %916 = dma.vmem_to_hbm [thread:$0]  (%p1538_p1), %s1461_s11, 256, %s1459_s9, %s682_s27, %s1176_s30, %s1176_s30, %s1177_s15  }
 0x16d PF: > { %s1539_s10 = sld [smem:[#allocation12_spill]]  ;;  %s1540_s22 = sld [smem:[#allocation13_spill]] }
 0x16e   : > { %p1542_p9 = scmp.ge.s32.totalorder %s1167_s29, 2 }
 0x173   : > { %s711_s23 = sand.u32 1, %s1539_s10   ;;  %p1541_p5 = scmp.ne.s32.totalorder %s1540_s22, 0 }
 0x174   : > { %s712_s13 = scalar_lea.sflag [#allocation4], %s711_s23 }
 0x175   : > { %p930_p11 = pnand %p1542_p9, %p1541_p5 }
 0x177   : > { %1142 = dma.done.wait (!%p930_p11), %s712_s13, 256  }
 0x178   : > { %1144 = vsyncadd (!%p930_p11), %s712_s13, 4294967040  ;;  %s24_s29 = sadd.s32 1, %s1167_s29   ;;  %s1543_s24 = smov %s1151_s25 }
 0x179   : > { %p21_p0 = scmp.ge.s32.totalorder %s24_s29, 4   ;;  %s1544_s25 = smov %s1155_s26 }
 0x17a   : > { %s1545_s26 = smov %s1366_s8  ;;  %s1546_s27 = smov %s1163_s28 }
 0x17b   : > { %s1547_s28 = smov %s1549_s16  ;;  %23 = sbr.rel (!%p21_p0) target bundleno = 7 (0x7), region = 107 }
 0x182   :  { %717 = vsyncpa [#allocation3], 1 }
 0x183   :  { %719 = vsyncpa [#allocation3 + $0x1], 1 }
 0x184   :  { %720 = vsyncpa [#allocation6], 1 }
 0x185   :  { %721 = vsyncpa [#allocation4], 1 }
 0x186   :  { %723 = vsyncpa [#allocation4 + $0x1], 1 }

</bundles_post_ra>
